<compile_context>
chip_gen: v7x
topology: tpu7x:2x2x1
jax: 0.10.0
libtpu: 0.0.40
codegen_flags: <defaults>
</compile_context>

<pallas_src>
import jax
import jax.numpy as jnp
from jax import lax
from jax.experimental import pallas as pl
from jax.experimental.pallas import tpu as pltpu

H = W = 28                                # AvgPool2d(12) after conv2 => 28x28 input
N_CLASSES = 10
B = 2

H1, W1 = H - 2, W - 2                     # 26, 26  conv1 (3x3, stride 1, VALID)
H2, W2 = (H1 - 3) // 2 + 1, (W1 - 3) // 2 + 1   # 12, 12  conv2 (3x3, stride 2, VALID)
P2 = H2 * W2                              # 144 conv2 output positions per image
C1, C2 = 8, 16
K2 = 9 * C1                               # 72 = conv2 im2col features (kh, kw, ci)
NTAP = 25                                 # 5x5 unique input offsets per conv2 output


# ---------------------------------------------------------------------------
# Fused kernel: conv1+ReLU (emitted directly as conv2 im2col patches), conv2
# +ReLU, AvgPool2d(12), 1x1 conv3.  Batch folded into the M dimension.
# ---------------------------------------------------------------------------
def fused_convnet_kernel(x25_ref, w1_ref, b1_ref, w2_ref, b2_ref, w3_ref, b3_ref, o_ref):
    # x25_ref: (B*144, 25)  input taps  x[b, r+2i, s+2j]         (row = b,i,j; col = r,s)
    # w1_ref : (25, 72)     conv1 folded into conv2-patch space  (col = kh,kw,ci)
    # b1_ref : (1, 72)      conv1 bias tiled over the 9 conv2 taps
    # w2_ref : (72, C2), b2_ref: (1, C2)
    # w3_ref : (C2, NC), b3_ref: (1, NC)
    # o_ref  : (B, NC)
    bsz, _ = o_ref.shape
    rows_per_img = x25_ref.shape[0] // bsz            # 144 (static)

    # conv1 + ReLU, produced directly as the im2col patch matrix for conv2.
    p2 = jnp.dot(x25_ref[...], w1_ref[...], preferred_element_type=jnp.float32)
    p2 = jnp.maximum(p2 + b1_ref[...], 0.0)           # (B*144, 72)

    # conv2 + ReLU.
    y2 = jnp.dot(p2, w2_ref[...], preferred_element_type=jnp.float32)
    y2 = jnp.maximum(y2 + b2_ref[...], 0.0)           # (B*144, C2)

    # AvgPool2d(12): mean over each image's 144 rows (8-aligned sublane slices,
    # XLU reduce — no extra MXU push).
    pooled = jnp.concatenate(
        [jnp.sum(y2[b * rows_per_img:(b + 1) * rows_per_img, :], axis=0, keepdims=True)
         for b in range(bsz)],
        axis=0,
    ) * (1.0 / rows_per_img)                          # (B, C2)

    # 1x1 conv3 (single tiny dot) + bias.
    logits = jnp.dot(pooled, w3_ref[...], preferred_element_type=jnp.float32)
    o_ref[...] = logits + b3_ref[...]                 # (B, NC)


# ---------------------------------------------------------------------------
# One-time parameter repacking (hoisted out of the per-call path).
# ---------------------------------------------------------------------------
def prepare_params(w1, b1, w2, b2, w3, b3):
    """Repack torch-layout conv weights into the matmul operands the kernel expects."""
    n_classes = w3.shape[0]

    # Fold conv1 into "conv2 im2col patch" space:
    #   W1_25[(r,s), (kh,kw,ci)] = w1[ci, 0, r-kh, s-kw]   (0 when out of range)
    # so that  x25 @ W1_25  gives relu-able conv1 outputs at position (2i+kh, 2j+kw).
    w1f = w1.astype(jnp.float32)
    w1_25 = jnp.zeros((NTAP, K2), jnp.float32)
    for kh in range(3):
        for kw in range(3):
            col0 = (kh * 3 + kw) * C1
            for dh in range(3):
                for dw in range(3):
                    r, s = kh + dh, kw + dw
                    w1_25 = w1_25.at[r * 5 + s, col0:col0 + C1].set(w1f[:, 0, dh, dw])

    b1_rep = jnp.tile(b1.astype(jnp.float32), 9).reshape(1, K2)          # col (kh,kw,ci) -> b1[ci]
    w2_mat = jnp.transpose(w2, (2, 3, 1, 0)).reshape(K2, C2).astype(jnp.float32)
    b2_mat = b2.reshape(1, C2).astype(jnp.float32)
    w3_mat = w3[:, :, 0, 0].T.astype(jnp.float32)                        # (C2, NC)
    b3_mat = b3.reshape(1, n_classes).astype(jnp.float32)
    return (w1_25, b1_rep, w2_mat, b2_mat, w3_mat, b3_mat)


# ---------------------------------------------------------------------------
# Forward: tap gather (cheap XLA glue on the raw input) + one pallas_call.
# ---------------------------------------------------------------------------
@jax.jit
def too_simple_convnet_forward(x, params):
    """x: (B, H*W) float32 -> logits (B, n_classes), matching the torch module."""
    w1_25, b1_rep, w2_mat, b2_mat, w3_mat, b3_mat = params
    bsz = x.shape[0]
    n_classes = w3_mat.shape[1]

    x2d = x.reshape(bsz, H, W).astype(jnp.float32)
    # Unique input taps for every conv2 output position (stride-2 receptive
    # field covers input offsets 0..4 in each axis):
    #   x25[b*144 + i*12 + j, r*5 + s] = x[b, r + 2i, s + 2j]
    taps = [x2d[:, r:r + 2 * H2:2, s:s + 2 * W2:2] for r in range(5) for s in range(5)]
    x25 = jnp.stack(taps, axis=-1).reshape(bsz * P2, NTAP)               # (B*144, 25)

    vmem_spec = pl.BlockSpec(memory_space=pltpu.MemorySpace.VMEM)
    out = pl.pallas_call(
        fused_convnet_kernel,
        out_shape=jax.ShapeDtypeStruct((bsz, n_classes), jnp.float32),
        in_specs=[vmem_spec] * 7,
        out_specs=vmem_spec,
    )(x25, w1_25, b1_rep, w2_mat, b2_mat, w3_mat, b3_mat)
    return out                                                           # (B, n_classes)


# Plain-JAX reference (mirrors the torch forward) for a correctness check.
def reference_forward(x, w1, b1, w2, b2, w3, b3):
    bsz = x.shape[0]
    n_classes = w3.shape[0]
    xi = x.reshape(bsz, 1, H, W).astype(jnp.float32)
    dn = ("NCHW", "OIHW", "NCHW")
    y1 = lax.conv_general_dilated(xi, w1, (1, 1), "VALID", dimension_numbers=dn)
    y1 = jnp.maximum(y1 + b1.reshape(1, C1, 1, 1), 0.0)
    y2 = lax.conv_general_dilated(y1, w2, (2, 2), "VALID", dimension_numbers=dn)
    y2 = jnp.maximum(y2 + b2.reshape(1, C2, 1, 1), 0.0)
    pooled = jnp.mean(y2, axis=(2, 3), keepdims=True)                    # AvgPool2d(12)
    y3 = lax.conv_general_dilated(pooled, w3, (1, 1), "VALID", dimension_numbers=dn)
    return (y3 + b3.reshape(1, n_classes, 1, 1))[:, :, 0, 0]


if __name__ == "__main__":
    key = jax.random.PRNGKey(0)
    kx, k1, k2, k3, k4, k5, k6 = jax.random.split(key, 7)

    # Deterministic parameter init (same shapes as the torch module's layers).
    w1 = jax.random.normal(k1, (C1, 1, 3, 3), jnp.float32) * 0.1
    b1 = jax.random.normal(k2, (C1,), jnp.float32) * 0.1
    w2 = jax.random.normal(k3, (C2, C1, 3, 3), jnp.float32) * 0.1
    b2 = jax.random.normal(k4, (C2,), jnp.float32) * 0.1
    w3 = jax.random.normal(k5, (N_CLASSES, C2, 1, 1), jnp.float32) * 0.1
    b3 = jax.random.normal(k6, (N_CLASSES,), jnp.float32) * 0.1

    x = jax.random.normal(kx, (B, H * W), jnp.float32)

    params = prepare_params(w1, b1, w2, b2, w3, b3)   # done once, outside the hot path
    out = too_simple_convnet_forward(x, params)
    out = jax.block_until_ready(out)

    ref = reference_forward(x, w1, b1, w2, b2, w3, b3)
    assert out.shape == (B, N_CLASSES)
    assert jnp.allclose(out, ref, atol=2e-3, rtol=2e-3), (out, ref)

    print("KERNEL_OK")
</pallas_src>

<mosaic_0001>
module attributes {stable_mosaic.version = 11 : i64} {
  func.func @fused_convnet_kernel(%arg0: memref<288x25xf32, #tpu.memory_space<vmem>>, %arg1: memref<25x72xf32, #tpu.memory_space<vmem>>, %arg2: memref<1x72xf32, #tpu.memory_space<vmem>>, %arg3: memref<72x16xf32, #tpu.memory_space<vmem>>, %arg4: memref<1x16xf32, #tpu.memory_space<vmem>>, %arg5: memref<16x10xf32, #tpu.memory_space<vmem>>, %arg6: memref<1x10xf32, #tpu.memory_space<vmem>>, %arg7: memref<2x10xf32, #tpu.memory_space<vmem>>) attributes {dimension_semantics = [], scalar_prefetch = 0 : i64, scratch_operands = 0 : i64, tpu.core_type = #tpu.core_type<tc>} {
    %c0 = arith.constant 0 : index
    %c0_0 = arith.constant 0 : index
    %0 = vector.load %arg0[%c0, %c0_0] : memref<288x25xf32, #tpu.memory_space<vmem>>, vector<288x25xf32>
    %c0_1 = arith.constant 0 : index
    %c0_2 = arith.constant 0 : index
    %1 = vector.load %arg1[%c0_1, %c0_2] : memref<25x72xf32, #tpu.memory_space<vmem>>, vector<25x72xf32>
    %cst = arith.constant dense<0.000000e+00> : vector<288x72xf32>
    %2 = tpu.matmul %0, %1, %cst {dimension_numbers = #tpu.dot_dimension_numbers<[1], [0], [0], [1], [0, 0, 1, 1], [], []>} : vector<288x25xf32>, vector<25x72xf32>, vector<288x72xf32> -> vector<288x72xf32>
    %c0_3 = arith.constant 0 : index
    %c0_4 = arith.constant 0 : index
    %3 = vector.load %arg2[%c0_3, %c0_4] : memref<1x72xf32, #tpu.memory_space<vmem>>, vector<1x72xf32>
    %4 = vector.broadcast %3 : vector<1x72xf32> to vector<288x72xf32>
    %5 = arith.addf %2, %4 : vector<288x72xf32>
    %cst_5 = arith.constant 0.000000e+00 : f32
    %6 = vector.broadcast %cst_5 : f32 to vector<288x72xf32>
    %7 = arith.maximumf %5, %6 : vector<288x72xf32>
    %c0_6 = arith.constant 0 : index
    %c0_7 = arith.constant 0 : index
    %8 = vector.load %arg3[%c0_6, %c0_7] : memref<72x16xf32, #tpu.memory_space<vmem>>, vector<72x16xf32>
    %cst_8 = arith.constant dense<0.000000e+00> : vector<288x16xf32>
    %9 = tpu.matmul %7, %8, %cst_8 {dimension_numbers = #tpu.dot_dimension_numbers<[1], [0], [0], [1], [0, 0, 1, 1], [], []>} : vector<288x72xf32>, vector<72x16xf32>, vector<288x16xf32> -> vector<288x16xf32>
    %c0_9 = arith.constant 0 : index
    %c0_10 = arith.constant 0 : index
    %10 = vector.load %arg4[%c0_9, %c0_10] : memref<1x16xf32, #tpu.memory_space<vmem>>, vector<1x16xf32>
    %11 = vector.broadcast %10 : vector<1x16xf32> to vector<288x16xf32>
    %12 = arith.addf %9, %11 : vector<288x16xf32>
    %cst_11 = arith.constant 0.000000e+00 : f32
    %13 = vector.broadcast %cst_11 : f32 to vector<288x16xf32>
    %14 = arith.maximumf %12, %13 : vector<288x16xf32>
    %15 = vector.extract_strided_slice %14 {offsets = [0, 0], sizes = [144, 16], strides = [1, 1]} : vector<288x16xf32> to vector<144x16xf32>
    %cst_12 = arith.constant dense<0.000000e+00> : vector<16xf32>
    %16 = vector.multi_reduction <add>, %15, %cst_12 [0] : vector<144x16xf32> to vector<16xf32>
    %17 = vector.shape_cast %16 : vector<16xf32> to vector<1x16xf32>
    %18 = vector.extract_strided_slice %14 {offsets = [144, 0], sizes = [144, 16], strides = [1, 1]} : vector<288x16xf32> to vector<144x16xf32>
    %cst_13 = arith.constant dense<0.000000e+00> : vector<16xf32>
    %19 = vector.multi_reduction <add>, %18, %cst_13 [0] : vector<144x16xf32> to vector<16xf32>
    %20 = vector.shape_cast %19 : vector<16xf32> to vector<1x16xf32>
    %21 = tpu.concatenate %17, %20 in 0 : vector<1x16xf32>, vector<1x16xf32> -> vector<2x16xf32>
    %cst_14 = arith.constant 0.0069444445 : f32
    %22 = vector.broadcast %cst_14 : f32 to vector<2x16xf32>
    %23 = arith.mulf %21, %22 : vector<2x16xf32>
    %c0_15 = arith.constant 0 : index
    %c0_16 = arith.constant 0 : index
    %24 = vector.load %arg5[%c0_15, %c0_16] : memref<16x10xf32, #tpu.memory_space<vmem>>, vector<16x10xf32>
    %cst_17 = arith.constant dense<0.000000e+00> : vector<2x10xf32>
    %25 = tpu.matmul %23, %24, %cst_17 {dimension_numbers = #tpu.dot_dimension_numbers<[1], [0], [0], [1], [0, 0, 1, 1], [], []>} : vector<2x16xf32>, vector<16x10xf32>, vector<2x10xf32> -> vector<2x10xf32>
    %c0_18 = arith.constant 0 : index
    %c0_19 = arith.constant 0 : index
    %26 = vector.load %arg6[%c0_18, %c0_19] : memref<1x10xf32, #tpu.memory_space<vmem>>, vector<1x10xf32>
    %27 = vector.broadcast %26 : vector<1x10xf32> to vector<2x10xf32>
    %28 = arith.addf %25, %27 : vector<2x10xf32>
    %c0_20 = arith.constant 0 : index
    %c0_21 = arith.constant 0 : index
    %29 = vector.load %arg7[%c0_20, %c0_21] : memref<2x10xf32, #tpu.memory_space<vmem>>, vector<2x10xf32>
    tpu.vector_store %arg7[%c0_20, %c0_21], %28 {strides = array<i32>} : memref<2x10xf32, #tpu.memory_space<vmem>>, vector<2x10xf32>,
    return
  }
}

</mosaic_0001>

<bundles_post_ra>
// kernel: too_simple_convnet_forward.1
= control target key start
LH: loop header
LB: loop body
LE: loop exit
PB: predicated region body
PF: predicated region fallthrough
CT: control target
= control target key end

     0   :  { %vm183_vm0 = vcmask 1040384   ;;  %vm74_vm1 = vcmask 203776   ;;  %vm1421_vm2 = vmmov 1   ;;  %s1831_s0 = inlined_call_operand.vmem [shape: f32[288,25], index: 0, kind: input, shape index: {}]   ;;  %s1832_s1 = inlined_call_operand.vmem [shape: f32[25,72], index: 1, kind: input, shape index: {}]   ;;  %s1833_s2 = inlined_call_operand.vmem [shape: f32[1,72], index: 2, kind: input, shape index: {}]   ;;  %s1834_s3 = inlined_call_operand.vmem [shape: f32[72,16], index: 3, kind: input, shape index: {}]   ;;  %s1835_s4 = inlined_call_operand.vmem [shape: f32[1,16], index: 4, kind: input, shape index: {}]   ;;  %s1836_s5 = inlined_call_operand.vmem [shape: f32[16,10], index: 5, kind: input, shape index: {}]   ;;  %s1837_s6 = inlined_call_operand.vmem [shape: f32[1,10], index: 6, kind: input, shape index: {}]   ;;  %s1838_s7 = inlined_call_operand.hbm [shape: f32[2,10], index: 7, kind: output, shape index: {}]  }
   0x1   :  { %v63_v0 = vld [vmem:[%s1832_s1] sm:$0xff]  ;;  %v64_v1 = vld [vmem:[%s1832_s1 + $0x8] sm:$0xff]  ;;  %v65_v2 = vld [vmem:[%s1832_s1 + $0x10] sm:$0xff] }
   0x2   :  { %v1363_v3 = vpack.c.bf16 %v64_v1, %v63_v0  ;;  %v66_v4 = vld [vmem:[%s1832_s1 + $0x18] sm:$0x1]  ;;  %v27_v5 = vld [vmem:[%s1831_s0] sm:$0xff]  ;;  %vm1368_vm3 = vmpackc.low %vm183_vm0, %vm1421_vm2 }
   0x3   :  { %v1367_v6 = vpack.c.bf16 %v66_v4, %v65_v2  ;;  %1230 = vmatprep.mubr.msk.f32.mxu0 %vm74_vm1, %v27_v5  ;;  %v28_v7 = vld [vmem:[%s1831_s0 + $0x8] sm:$0xff]  ;;  %v29_v8 = vld [vmem:[%s1831_s0 + $0x10] sm:$0xff]  ;;  %v30_v9 = vld [vmem:[%s1831_s0 + $0x18] sm:$0xff] }
   0x4   :  { %1364 = vmatprep.subr.bf16.mxu0 %v1363_v3  ;;  %v31_v10 = vld [vmem:[%s1831_s0 + $0x20] sm:$0xff]  ;;  %v469_v12 = vld [vmem:[%s1834_s3 + $0x8] sm:$0xff]  ;;  %v470_v13 = vld [vmem:[%s1834_s3 + $0x10] sm:$0xff] }
   0x5   :  { %1366 = vmatpush3.bf16.msra.mxu0 %v1363_v3  ;;  %v468_v11 = vld [vmem:[%s1834_s3] sm:$0xff]  ;;  %v471_v14 = vld [vmem:[%s1834_s3 + $0x18] sm:$0xff] }
   0x6   :  { %1369 = vmatprep.subr.msk.bf16.mxu0 %vm1368_vm3, %v1367_v6  ;;  %v1373_v15 = vpack.c.bf16 %v469_v12, %v468_v11  ;;  %v1377_v16 = vpack.c.bf16 %v471_v14, %v470_v13 }
   0x9   :  { %1372 = vmatpush3.bf16.msk.msra.mxu0 %vm1368_vm3, %v1367_v6 }
   0xc   :  { %1231 = vmatmul.mubr.msk.f32.vlgmr.msra.gmra.mrb[0].mxu0 %vm74_vm1, %v28_v7 }
   0xd   :  { %1233 = vmatprep.mubr.msk.f32.mxu0 %vm74_vm1, %v29_v8 }
  0x10   :  { %1234 = vmatmul.mubr.msk.f32.gmra.mrb[2].mxu0 %vm74_vm1, %v30_v9 }
  0x11   :  { %12 = vsyncpa [#allocation3], 0  ;;  %1236 = vmatprep.mubr.msk.f32.mxu0 %vm74_vm1, %v31_v10  ;;  %v32_v17 = vld [vmem:[%s1831_s0 + $0x28] sm:$0xff]  ;;  %v472_v18 = vld [vmem:[%s1834_s3 + $0x20] sm:$0xff]  ;;  %1374 = vmatprep.subr.bf16.mxu1 %v1373_v15  ;;  %vm484_vm4 = vcmask 588800   ;;  %vm1423_vm5 = vmmov 0  }
  0x12   :  { %v473_v19 = vld [vmem:[%s1834_s3 + $0x28] sm:$0xff]  ;;  %v33_v20 = vld [vmem:[%s1831_s0 + $0x30] sm:$0xff]  ;;  %1376 = vmatpush3.bf16.msra.mxu1 %v1373_v15  ;;  %v34_v22 = vld [vmem:[%s1831_s0 + $0x38] sm:$0xff]  ;;  %vm874_vm6 = vcmask 130048   ;;  %s1425_s8 = smov [#allocation2]   ;;  %vm1041_vm7 = vcmask 74752  }
  0x13   :  { %1378 = vmatprep.subr.bf16.mxu1 %v1377_v16  ;;  %v1381_v21 = vpack.c.bf16 %v473_v19, %v472_v18  ;;  %v35_v23 = vld [vmem:[%s1831_s0 + $0x40] sm:$0xff]  ;;  %v36_v24 = vld [vmem:[%s1831_s0 + $0x48] sm:$0xff]  ;;  %v37_v25 = vld [vmem:[%s1831_s0 + $0x50] sm:$0xff]  ;;  %s1049_s9 = sshll.u32 %s1425_s8, 4  ;;  %s1050_s9 = int_to_ptr.vmem [resolvable:$true] %s1049_s9 }
  0x14   :  { %1237 = vmatmul.mubr.msk.f32.gmra.mrb[4].mxu0 %vm74_vm1, %v32_v17  ;;  %v38_v26 = vld [vmem:[%s1831_s0 + $0x58] sm:$0xff]  ;;  %v39_v27 = vld [vmem:[%s1831_s0 + $0x60] sm:$0xff]  ;;  %v40_v28 = vld [vmem:[%s1831_s0 + $0x68] sm:$0xff]  ;;  %s1397_s10 = scalar_lea.vmem %s1050_s9, 32  ;;  %p1402_p1 = scmp.lt.s32.totalorder %s1050_s9, %s1050_s9 }
  0x15   :  { %1239 = vmatprep.mubr.msk.f32.mxu0 %vm74_vm1, %v33_v20  ;;  %v41_v29 = vld [vmem:[%s1831_s0 + $0x70] sm:$0xff]  ;;  %v42_v30 = vld [vmem:[%s1831_s0 + $0x78] sm:$0xff]  ;;  %v43_v31 = vld [vmem:[%s1831_s0 + $0x80] sm:$0xff]  ;;  %p1398_p0 = scmp.ne.s32.totalorder %s1050_s9, %s1397_s10  ;;  %p1403_p2 = scmp.lt.s32.totalorder %s1397_s10, %s1397_s10 }
  0x16   :  { %1380 = vmatpush3.bf16.msra.mxu1 %v1377_v16  ;;  %v44_v32 = vld [vmem:[%s1831_s0 + $0x88] sm:$0xff]  ;;  %v45_v33 = vld [vmem:[%s1831_s0 + $0x90] sm:$0xff]  ;;  %v46_v34 = vld [vmem:[%s1831_s0 + $0x98] sm:$0xff] }
  0x17   :  { %1382 = vmatprep.subr.bf16.mxu1 %v1381_v21  ;;  %v47_v35 = vld [vmem:[%s1831_s0 + $0xa0] sm:$0xff]  ;;  %v48_v36 = vld [vmem:[%s1831_s0 + $0xa8] sm:$0xff]  ;;  %v49_v37 = vld [vmem:[%s1831_s0 + $0xb0] sm:$0xff]  ;;  %p1404_p3 = por %p1403_p2, %p1402_p1 }
  0x18   :  { %1240 = vmatmul.mubr.msk.f32.gmra.mrb[6].mxu0 %vm74_vm1, %v34_v22  ;;  %v50_v38 = vld [vmem:[%s1831_s0 + $0xb8] sm:$0xff]  ;;  %v51_v39 = vld [vmem:[%s1831_s0 + $0xc0] sm:$0xff]  ;;  %v52_v40 = vld [vmem:[%s1831_s0 + $0xc8] sm:$0xff] }
  0x19   :  { %1242 = vmatprep.mubr.msk.f32.mxu0 %vm74_vm1, %v35_v23  ;;  %v53_v41 = vld [vmem:[%s1831_s0 + $0xd0] sm:$0xff]  ;;  %v54_v42 = vld [vmem:[%s1831_s0 + $0xd8] sm:$0xff]  ;;  %v55_v43 = vld [vmem:[%s1831_s0 + $0xe0] sm:$0xff]  ;;  %p1405_p4 = pnand %p1404_p3, %p1398_p0 }
  0x1a   :  { %1384 = vmatpush3.bf16.msra.mxu1 %v1381_v21  ;;  %v56_v44 = vld [vmem:[%s1831_s0 + $0xe8] sm:$0xff]  ;;  %v57_v45 = vld [vmem:[%s1831_s0 + $0xf0] sm:$0xff]  ;;  %v58_v46 = vld [vmem:[%s1831_s0 + $0xf8] sm:$0xff] }
  0x1b   :  { %v59_v47 = vld [vmem:[%s1831_s0 + $0x100] sm:$0xff]  ;;  %v60_v48 = vld [vmem:[%s1831_s0 + $0x108] sm:$0xff]  ;;  %v61_v49 = vld [vmem:[%s1831_s0 + $0x110] sm:$0xff] }
  0x1c   :  { %1243 = vmatmul.mubr.msk.f32.gmra.mrb[8].mxu0 %vm74_vm1, %v36_v24  ;;  %v62_v50 = vld [vmem:[%s1831_s0 + $0x118] sm:$0xff]  ;;  %v474_v51 = vld [vmem:[%s1834_s3 + $0x30] sm:$0xff]  ;;  %v476_v54 = vld [vmem:[%s1834_s3 + $0x40] sm:$0xff] }
  0x1d   :  { %1245 = vmatprep.mubr.msk.f32.mxu0 %vm74_vm1, %v37_v25  ;;  %v475_v52 = vld [vmem:[%s1834_s3 + $0x38] sm:$0xff]  ;;  %v1653_v55 = vld [vmem:[%s1833_s2] ss:$0 sm:$0xff] }
  0x1e   :  { %v1385_v53 = vpack.c.bf16 %v475_v52, %v474_v51 }
  0x20   :  { %1246 = vmatmul.mubr.msk.f32.gmra.mrb[10].mxu0 %vm74_vm1, %v38_v26  ;;  %1386 = vmatprep.subr.bf16.mxu1 %v1385_v53 }
  0x21   :  { %1248 = vmatprep.mubr.msk.f32.mxu0 %vm74_vm1, %v39_v27  ;;  %1388 = vmatpush3.bf16.msra.mxu1 %v1385_v53 }
  0x22   :  { %1300 = vmatprep.subr.mxu1 %v476_v54 }
  0x24   :  { %1249 = vmatmul.mubr.msk.f32.gmra.mrb[12].mxu0 %vm74_vm1, %v40_v28 }
  0x25   :  { %1251 = vmatprep.mubr.msk.f32.mxu0 %vm74_vm1, %v41_v29  ;;  %1301 = vmatpush3.msra.mxu1 %v476_v54 }
  0x28   :  { %1252 = vmatmul.mubr.msk.f32.gmra.mrb[14].mxu0 %vm74_vm1, %v42_v30 }
  0x29   :  { %1254 = vmatprep.mubr.msk.f32.mxu0 %vm74_vm1, %v43_v31 }
  0x2c   :  { %1255 = vmatmul.mubr.msk.f32.gmra.mrb[16].mxu0 %vm74_vm1, %v44_v32 }
  0x2d   :  { %1257 = vmatprep.mubr.msk.f32.mxu0 %vm74_vm1, %v45_v33 }
  0x30   :  { %1258 = vmatmul.mubr.msk.f32.gmra.mrb[18].mxu0 %vm74_vm1, %v46_v34 }
  0x31   :  { %1260 = vmatprep.mubr.msk.f32.mxu0 %vm74_vm1, %v47_v35 }
  0x34   :  { %1261 = vmatmul.mubr.msk.f32.gmra.mrb[20].mxu0 %vm74_vm1, %v48_v36 }
  0x35   :  { %1263 = vmatprep.mubr.msk.f32.mxu0 %vm74_vm1, %v49_v37 }
  0x38   :  { %1264 = vmatmul.mubr.msk.f32.gmra.mrb[22].mxu0 %vm74_vm1, %v50_v38 }
  0x39   :  { %1266 = vmatprep.mubr.msk.f32.mxu0 %vm74_vm1, %v51_v39 }
  0x3c   :  { %1267 = vmatmul.mubr.msk.f32.gmra.mrb[24].mxu0 %vm74_vm1, %v52_v40 }
  0x3d   :  { %1269 = vmatprep.mubr.msk.f32.mxu0 %vm74_vm1, %v53_v41 }
  0x40   :  { %1270 = vmatmul.mubr.msk.f32.gmra.mrb[26].mxu0 %vm74_vm1, %v54_v42 }
  0x41   :  { %1272 = vmatprep.mubr.msk.f32.mxu0 %vm74_vm1, %v55_v43 }
  0x44   :  { %1273 = vmatmul.mubr.msk.f32.gmra.mrb[28].mxu0 %vm74_vm1, %v56_v44 }
  0x45   :  { %1275 = vmatprep.mubr.msk.f32.mxu0 %vm74_vm1, %v57_v45 }
  0x48   :  { %1276 = vmatmul.mubr.msk.f32.gmra.mrb[30].mxu0 %vm74_vm1, %v58_v46 }
  0x49   :  { %1278 = vmatprep.mubr.msk.f32.mxu0 %vm74_vm1, %v59_v47 }
  0x4c   :  { %1279 = vmatmul.mubr.msk.f32.gmra.mrb[32].mxu0 %vm74_vm1, %v60_v48 }
  0x4d   :  { %1281 = vmatprep.mubr.msk.f32.mxu0 %vm74_vm1, %v61_v49 }
  0x50   :  { %1282 = vmatmul.mubr.msk.f32.gmra.mrb[34].mxu0 %vm74_vm1, %v62_v50 }
  0xdf   :  { %v1232_v56 = vpop.f32.mrb[0].mxu0 }
  0xe0   :  { %v259_v57 = vadd.f32 %v1232_v56, %v1653_v55  ;;  %v253_v58 = vpop.f32.mrb[1].mxu0 }
  0xe1   :  { %v254_v59 = vadd.f32 %v1653_v55, %v253_v58 }
  0xe2   :  { %v433_v62 = vmax.f32 %v259_v57, 0.0 }
  0xe3   :  { %v432_v60 = vmax.f32 %v254_v59, 0.0  ;;  %v1235_v61 = vpop.f32.mrb[2].mxu0 }
  0xe4   :  { %v269_v63 = vadd.f32 %v1235_v61, %v1653_v55  ;;  %v263_v0 = vpop.f32.mrb[3].mxu0 }
  0xe5   :  { %v264_v1 = vadd.f32 %v1653_v55, %v263_v0  ;;  %1302 = vmatprep.mubr.msk.f32.mxu1 %vm484_vm4, %v432_v60 }
  0xe6   :  { %1303 = vmatmul.mubr.msk.f32.vlgmr.msra.gmra.mrb[0].mxu1 %vm484_vm4, %v433_v62  ;;  %v435_v4 = vmax.f32 %v269_v63, 0.0 }
  0xe7   :  { %v434_v2 = vmax.f32 %v264_v1, 0.0  ;;  %v1238_v3 = vpop.f32.mrb[4].mxu0 }
  0xe8   :  { %v279_v5 = vadd.f32 %v1238_v3, %v1653_v55  ;;  %v273_v6 = vpop.f32.mrb[5].mxu0 }
  0xe9   :  { %v274_v7 = vadd.f32 %v1653_v55, %v273_v6  ;;  %1305 = vmatprep.mubr.msk.f32.mxu1 %vm484_vm4, %v434_v2 }
  0xea   :  { %1306 = vmatmul.mubr.msk.f32.gmra.mrb[2].mxu1 %vm484_vm4, %v435_v4  ;;  %v437_v10 = vmax.f32 %v279_v5, 0.0 }
  0xeb   :  { %v436_v8 = vmax.f32 %v274_v7, 0.0  ;;  %v1241_v9 = vpop.f32.mrb[6].mxu0 }
  0xec   :  { %v289_v11 = vadd.f32 %v1241_v9, %v1653_v55  ;;  %v283_v12 = vpop.f32.mrb[7].mxu0 }
  0xed   :  { %v284_v13 = vadd.f32 %v1653_v55, %v283_v12  ;;  %1308 = vmatprep.mubr.msk.f32.mxu1 %vm484_vm4, %v436_v8 }
  0xee   :  { %1309 = vmatmul.mubr.msk.f32.gmra.mrb[4].mxu1 %vm484_vm4, %v437_v10  ;;  %v439_v16 = vmax.f32 %v289_v11, 0.0 }
  0xef   :  { %v438_v14 = vmax.f32 %v284_v13, 0.0  ;;  %v1244_v15 = vpop.f32.mrb[8].mxu0 }
  0xf0   :  { %v299_v17 = vadd.f32 %v1244_v15, %v1653_v55  ;;  %v293_v18 = vpop.f32.mrb[9].mxu0 }
  0xf1   :  { %v294_v19 = vadd.f32 %v1653_v55, %v293_v18  ;;  %1311 = vmatprep.mubr.msk.f32.mxu1 %vm484_vm4, %v438_v14 }
  0xf2   :  { %1312 = vmatmul.mubr.msk.f32.gmra.mrb[6].mxu1 %vm484_vm4, %v439_v16  ;;  %v441_v22 = vmax.f32 %v299_v17, 0.0 }
  0xf3   :  { %v440_v20 = vmax.f32 %v294_v19, 0.0  ;;  %v1247_v21 = vpop.f32.mrb[10].mxu0 }
  0xf4   :  { %v309_v23 = vadd.f32 %v1247_v21, %v1653_v55  ;;  %v303_v24 = vpop.f32.mrb[11].mxu0 }
  0xf5   :  { %v304_v25 = vadd.f32 %v1653_v55, %v303_v24  ;;  %1314 = vmatprep.mubr.msk.f32.mxu1 %vm484_vm4, %v440_v20 }
  0xf6   :  { %1315 = vmatmul.mubr.msk.f32.gmra.mrb[8].mxu1 %vm484_vm4, %v441_v22  ;;  %v443_v28 = vmax.f32 %v309_v23, 0.0 }
  0xf7   :  { %v442_v26 = vmax.f32 %v304_v25, 0.0  ;;  %v1250_v27 = vpop.f32.mrb[12].mxu0 }
  0xf8   :  { %v319_v29 = vadd.f32 %v1250_v27, %v1653_v55  ;;  %v313_v30 = vpop.f32.mrb[13].mxu0 }
  0xf9   :  { %v314_v31 = vadd.f32 %v1653_v55, %v313_v30  ;;  %1317 = vmatprep.mubr.msk.f32.mxu1 %vm484_vm4, %v442_v26 }
  0xfa   :  { %1318 = vmatmul.mubr.msk.f32.gmra.mrb[10].mxu1 %vm484_vm4, %v443_v28  ;;  %v445_v34 = vmax.f32 %v319_v29, 0.0 }
  0xfb   :  { %v444_v32 = vmax.f32 %v314_v31, 0.0  ;;  %v1253_v33 = vpop.f32.mrb[14].mxu0 }
  0xfc   :  { %v329_v35 = vadd.f32 %v1253_v33, %v1653_v55  ;;  %v323_v36 = vpop.f32.mrb[15].mxu0 }
  0xfd   :  { %v324_v37 = vadd.f32 %v1653_v55, %v323_v36  ;;  %1320 = vmatprep.mubr.msk.f32.mxu1 %vm484_vm4, %v444_v32 }
  0xfe   :  { %1321 = vmatmul.mubr.msk.f32.gmra.mrb[12].mxu1 %vm484_vm4, %v445_v34  ;;  %v447_v40 = vmax.f32 %v329_v35, 0.0 }
  0xff   :  { %v446_v38 = vmax.f32 %v324_v37, 0.0  ;;  %v1256_v39 = vpop.f32.mrb[16].mxu0  ;;  %v959_v37 = vld [vmem:[%s1836_s5] sm:$0xff] }
 0x100   :  { %v339_v41 = vadd.f32 %v1256_v39, %v1653_v55  ;;  %v333_v42 = vpop.f32.mrb[17].mxu0  ;;  %v1422_v39 = vmov 0.0|0.0  }
 0x101   :  { %v334_v43 = vadd.f32 %v1653_v55, %v333_v42  ;;  %1323 = vmatprep.mubr.msk.f32.mxu1 %vm484_vm4, %v446_v38  ;;  %v960_v38 = vld [vmem:[%s1836_s5 + $0x8] sm:$0xff]  ;;  %1389 = vmatprep.subr.bf16.mxu0 %v1422_v39 }
 0x102   :  { %1324 = vmatmul.mubr.msk.f32.gmra.mrb[14].mxu1 %vm484_vm4, %v447_v40  ;;  %v449_v46 = vmax.f32 %v339_v41, 0.0  ;;  %v1424_v40 = vmov 0.0   ;;  %v1736_v41 = vld [vmem:[%s1835_s4] ss:$0 sm:$0xff] }
 0x103   :  { %v448_v44 = vmax.f32 %v334_v43, 0.0  ;;  %v1259_v45 = vpop.f32.mrb[18].mxu0  ;;  %1360 = vmatprep.mubr.msk.f32.mxu0 %vm1423_vm5, %v1424_v40 }
 0x104   :  { %v349_v47 = vadd.f32 %v1259_v45, %v1653_v55  ;;  %v343_v48 = vpop.f32.mrb[19].mxu0 }
 0x105   :  { %v344_v49 = vadd.f32 %v1653_v55, %v343_v48  ;;  %1326 = vmatprep.mubr.msk.f32.mxu1 %vm484_vm4, %v448_v44 }
 0x106   :  { %1327 = vmatmul.mubr.msk.f32.gmra.mrb[16].mxu1 %vm484_vm4, %v449_v46  ;;  %v451_v52 = vmax.f32 %v349_v47, 0.0 }
 0x107   :  { %v450_v50 = vmax.f32 %v344_v49, 0.0  ;;  %v1262_v51 = vpop.f32.mrb[20].mxu0 }
 0x108   :  { %v359_v53 = vadd.f32 %v1262_v51, %v1653_v55  ;;  %v353_v54 = vpop.f32.mrb[21].mxu0 }
 0x109   :  { %v354_v56 = vadd.f32 %v1653_v55, %v353_v54  ;;  %1329 = vmatprep.mubr.msk.f32.mxu1 %vm484_vm4, %v450_v50 }
 0x10a   :  { %1330 = vmatmul.mubr.msk.f32.gmra.mrb[18].mxu1 %vm484_vm4, %v451_v52  ;;  %v453_v59 = vmax.f32 %v359_v53, 0.0 }
 0x10b   :  { %v452_v57 = vmax.f32 %v354_v56, 0.0  ;;  %v1265_v58 = vpop.f32.mrb[22].mxu0 }
 0x10c   :  { %v369_v60 = vadd.f32 %v1265_v58, %v1653_v55  ;;  %v363_v61 = vpop.f32.mrb[23].mxu0 }
 0x10d   :  { %v364_v62 = vadd.f32 %v1653_v55, %v363_v61  ;;  %1332 = vmatprep.mubr.msk.f32.mxu1 %vm484_vm4, %v452_v57 }
 0x10e   :  { %1333 = vmatmul.mubr.msk.f32.gmra.mrb[20].mxu1 %vm484_vm4, %v453_v59  ;;  %v455_v1 = vmax.f32 %v369_v60, 0.0 }
 0x10f   :  { %v454_v63 = vmax.f32 %v364_v62, 0.0  ;;  %v1268_v0 = vpop.f32.mrb[24].mxu0 }
 0x110   :  { %v379_v2 = vadd.f32 %v1268_v0, %v1653_v55  ;;  %v373_v3 = vpop.f32.mrb[25].mxu0 }
 0x111   :  { %v374_v4 = vadd.f32 %v1653_v55, %v373_v3  ;;  %1335 = vmatprep.mubr.msk.f32.mxu1 %vm484_vm4, %v454_v63 }
 0x112   :  { %1336 = vmatmul.mubr.msk.f32.gmra.mrb[22].mxu1 %vm484_vm4, %v455_v1  ;;  %v457_v7 = vmax.f32 %v379_v2, 0.0 }
 0x113   :  { %v456_v5 = vmax.f32 %v374_v4, 0.0  ;;  %v1271_v6 = vpop.f32.mrb[26].mxu0 }
 0x114   :  { %v389_v8 = vadd.f32 %v1271_v6, %v1653_v55  ;;  %v383_v9 = vpop.f32.mrb[27].mxu0 }
 0x115   :  { %v384_v10 = vadd.f32 %v1653_v55, %v383_v9  ;;  %1338 = vmatprep.mubr.msk.f32.mxu1 %vm484_vm4, %v456_v5 }
 0x116   :  { %1339 = vmatmul.mubr.msk.f32.gmra.mrb[24].mxu1 %vm484_vm4, %v457_v7  ;;  %v459_v13 = vmax.f32 %v389_v8, 0.0 }
 0x117   :  { %v458_v11 = vmax.f32 %v384_v10, 0.0  ;;  %v1274_v12 = vpop.f32.mrb[28].mxu0 }
 0x118   :  { %v399_v14 = vadd.f32 %v1274_v12, %v1653_v55  ;;  %v393_v15 = vpop.f32.mrb[29].mxu0 }
 0x119   :  { %v394_v16 = vadd.f32 %v1653_v55, %v393_v15  ;;  %1341 = vmatprep.mubr.msk.f32.mxu1 %vm484_vm4, %v458_v11 }
 0x11a   :  { %1342 = vmatmul.mubr.msk.f32.gmra.mrb[26].mxu1 %vm484_vm4, %v459_v13  ;;  %v461_v19 = vmax.f32 %v399_v14, 0.0 }
 0x11b   :  { %v460_v17 = vmax.f32 %v394_v16, 0.0  ;;  %v1277_v18 = vpop.f32.mrb[30].mxu0 }
 0x11c   :  { %v409_v20 = vadd.f32 %v1277_v18, %v1653_v55  ;;  %v403_v21 = vpop.f32.mrb[31].mxu0 }
 0x11d   :  { %v404_v22 = vadd.f32 %v1653_v55, %v403_v21  ;;  %1344 = vmatprep.mubr.msk.f32.mxu1 %vm484_vm4, %v460_v17 }
 0x11e   :  { %1345 = vmatmul.mubr.msk.f32.gmra.mrb[28].mxu1 %vm484_vm4, %v461_v19  ;;  %v463_v25 = vmax.f32 %v409_v20, 0.0 }
 0x11f   :  { %v462_v23 = vmax.f32 %v404_v22, 0.0  ;;  %v1280_v24 = vpop.f32.mrb[32].mxu0 }
 0x120   :  { %v419_v26 = vadd.f32 %v1280_v24, %v1653_v55  ;;  %v413_v27 = vpop.f32.mrb[33].mxu0 }
 0x121   :  { %v414_v28 = vadd.f32 %v1653_v55, %v413_v27  ;;  %1347 = vmatprep.mubr.msk.f32.mxu1 %vm484_vm4, %v462_v23 }
 0x122   :  { %1348 = vmatmul.mubr.msk.f32.gmra.mrb[30].mxu1 %vm484_vm4, %v463_v25  ;;  %v465_v31 = vmax.f32 %v419_v26, 0.0 }
 0x123   :  { %v464_v29 = vmax.f32 %v414_v28, 0.0  ;;  %v1283_v30 = vpop.f32.mrb[34].mxu0 }
 0x124   :  { %v429_v32 = vadd.f32 %v1283_v30, %v1653_v55  ;;  %v423_v33 = vpop.f32.mrb[35].mxu0 }
 0x125   :  { %v424_v34 = vadd.f32 %v1653_v55, %v423_v33  ;;  %1350 = vmatprep.mubr.msk.f32.mxu1 %vm484_vm4, %v464_v29  ;;  %v1390_v55 = vpack.c.bf16 %v960_v38, %v959_v37 }
 0x126   :  { %1351 = vmatmul.mubr.msk.f32.gmra.mrb[32].mxu1 %vm484_vm4, %v465_v31  ;;  %v467_v36 = vmax.f32 %v429_v32, 0.0 }
 0x127   :  { %v466_v35 = vmax.f32 %v424_v34, 0.0  ;;  %1391 = vmatpush3.bf16.msra.mxu0 %v1390_v55 }
 0x129   :  { %1353 = vmatprep.mubr.msk.f32.mxu1 %vm484_vm4, %v466_v35 }
 0x12a   :  { %1354 = vmatmul.mubr.msk.f32.gmra.mrb[34].mxu1 %vm484_vm4, %v467_v36 }
 0x1b9   :  { %v1304_v42 = vpop.f32.mrb[0].mxu1 }
 0x1ba   :  { %v665_v43 = vadd.f32 %v1304_v42, %v1736_v41  ;;  %v659_v44 = vpop.f32.mrb[1].mxu1 }
 0x1bb   :  { %v660_v45 = vadd.f32 %v1736_v41, %v659_v44 }
 0x1bc   :  { %v839_v46 = vmax.f32 %v665_v43, 0.0 }
 0x1bd   :  { %v838_v47 = vmax.f32 %v660_v45, 0.0  ;;  %v1307_v48 = vpop.f32.mrb[2].mxu1 }
 0x1be   :  { %v876_v49 = vsel %vm874_vm6, %v839_v46, 0.0  ;;  %v675_v50 = vadd.f32 %v1307_v48, %v1736_v41  ;;  %v669_v51 = vpop.f32.mrb[3].mxu1 }
 0x1bf   :  { %v875_v52 = vsel %vm874_vm6, %v838_v47, 0.0  ;;  %v670_v53 = vadd.f32 %v1736_v41, %v669_v51 }
 0x1c0   :  { %v877_v54 = vadd.f32 %v876_v49, %v875_v52  ;;  %v841_v56 = vmax.f32 %v675_v50, 0.0 }
 0x1c1   :  { %v840_v57 = vmax.f32 %v670_v53, 0.0  ;;  %v1310_v58 = vpop.f32.mrb[4].mxu1 }
 0x1c2   :  { %v685_v59 = vadd.f32 %v1310_v58, %v1736_v41  ;;  %v679_v60 = vpop.f32.mrb[5].mxu1  ;;  %v880_v0 = vsel %vm874_vm6, %v841_v56, 0.0 }
 0x1c3   :  { %v878_v61 = vsel %vm874_vm6, %v840_v57, 0.0  ;;  %v680_v62 = vadd.f32 %v1736_v41, %v679_v60 }
 0x1c4   :  { %v879_v63 = vadd.f32 %v878_v61, %v877_v54  ;;  %v843_v1 = vmax.f32 %v685_v59, 0.0 }
 0x1c5   :  { %v842_v2 = vmax.f32 %v680_v62, 0.0  ;;  %v1313_v3 = vpop.f32.mrb[6].mxu1 }
 0x1c6   :  { %v881_v4 = vadd.f32 %v880_v0, %v879_v63  ;;  %v695_v5 = vadd.f32 %v1313_v3, %v1736_v41  ;;  %v689_v6 = vpop.f32.mrb[7].mxu1  ;;  %v884_v10 = vsel %vm874_vm6, %v843_v1, 0.0 }
 0x1c7   :  { %v882_v7 = vsel %vm874_vm6, %v842_v2, 0.0  ;;  %v690_v8 = vadd.f32 %v1736_v41, %v689_v6 }
 0x1c8   :  { %v883_v9 = vadd.f32 %v882_v7, %v881_v4  ;;  %v845_v11 = vmax.f32 %v695_v5, 0.0 }
 0x1c9   :  { %v844_v12 = vmax.f32 %v690_v8, 0.0  ;;  %v1316_v13 = vpop.f32.mrb[8].mxu1 }
 0x1ca   :  { %v885_v14 = vadd.f32 %v884_v10, %v883_v9  ;;  %v705_v15 = vadd.f32 %v1316_v13, %v1736_v41  ;;  %v699_v16 = vpop.f32.mrb[9].mxu1  ;;  %v888_v20 = vsel %vm874_vm6, %v845_v11, 0.0 }
 0x1cb   :  { %v886_v17 = vsel %vm874_vm6, %v844_v12, 0.0  ;;  %v700_v18 = vadd.f32 %v1736_v41, %v699_v16 }
 0x1cc   :  { %v887_v19 = vadd.f32 %v886_v17, %v885_v14  ;;  %v847_v21 = vmax.f32 %v705_v15, 0.0 }
 0x1cd   :  { %v846_v22 = vmax.f32 %v700_v18, 0.0  ;;  %v1319_v23 = vpop.f32.mrb[10].mxu1 }
 0x1ce   :  { %v889_v24 = vadd.f32 %v888_v20, %v887_v19  ;;  %v715_v25 = vadd.f32 %v1319_v23, %v1736_v41  ;;  %v709_v26 = vpop.f32.mrb[11].mxu1  ;;  %v892_v30 = vsel %vm874_vm6, %v847_v21, 0.0 }
 0x1cf   :  { %v890_v27 = vsel %vm874_vm6, %v846_v22, 0.0  ;;  %v710_v28 = vadd.f32 %v1736_v41, %v709_v26 }
 0x1d0   :  { %v891_v29 = vadd.f32 %v890_v27, %v889_v24  ;;  %v849_v31 = vmax.f32 %v715_v25, 0.0 }
 0x1d1   :  { %v848_v32 = vmax.f32 %v710_v28, 0.0  ;;  %v1322_v33 = vpop.f32.mrb[12].mxu1 }
 0x1d2   :  { %v893_v34 = vadd.f32 %v892_v30, %v891_v29  ;;  %v725_v35 = vadd.f32 %v1322_v33, %v1736_v41  ;;  %v719_v36 = vpop.f32.mrb[13].mxu1  ;;  %v896_v55 = vsel %vm874_vm6, %v849_v31, 0.0 }
 0x1d3   :  { %v894_v37 = vsel %vm874_vm6, %v848_v32, 0.0  ;;  %v720_v38 = vadd.f32 %v1736_v41, %v719_v36 }
 0x1d4   :  { %v895_v39 = vadd.f32 %v894_v37, %v893_v34  ;;  %v851_v40 = vmax.f32 %v725_v35, 0.0 }
 0x1d5   :  { %v850_v42 = vmax.f32 %v720_v38, 0.0  ;;  %v1325_v43 = vpop.f32.mrb[14].mxu1 }
 0x1d6   :  { %v897_v44 = vadd.f32 %v896_v55, %v895_v39  ;;  %v735_v45 = vadd.f32 %v1325_v43, %v1736_v41  ;;  %v729_v46 = vpop.f32.mrb[15].mxu1  ;;  %v900_v50 = vsel %vm874_vm6, %v851_v40, 0.0 }
 0x1d7   :  { %v898_v47 = vsel %vm874_vm6, %v850_v42, 0.0  ;;  %v730_v48 = vadd.f32 %v1736_v41, %v729_v46 }
 0x1d8   :  { %v899_v49 = vadd.f32 %v898_v47, %v897_v44  ;;  %v853_v51 = vmax.f32 %v735_v45, 0.0 }
 0x1d9   :  { %v852_v52 = vmax.f32 %v730_v48, 0.0  ;;  %v1328_v53 = vpop.f32.mrb[16].mxu1 }
 0x1da   :  { %v901_v54 = vadd.f32 %v900_v50, %v899_v49  ;;  %v745_v56 = vadd.f32 %v1328_v53, %v1736_v41  ;;  %v739_v57 = vpop.f32.mrb[17].mxu1  ;;  %v904_v61 = vsel %vm874_vm6, %v853_v51, 0.0 }
 0x1db   :  { %v902_v58 = vsel %vm874_vm6, %v852_v52, 0.0  ;;  %v740_v59 = vadd.f32 %v1736_v41, %v739_v57 }
 0x1dc   :  { %v903_v60 = vadd.f32 %v902_v58, %v901_v54  ;;  %v855_v62 = vmax.f32 %v745_v56, 0.0 }
 0x1dd   :  { %v854_v63 = vmax.f32 %v740_v59, 0.0  ;;  %v1331_v0 = vpop.f32.mrb[18].mxu1 }
 0x1de   :  { %v905_v1 = vadd.f32 %v904_v61, %v903_v60  ;;  %v755_v2 = vadd.f32 %v1331_v0, %v1736_v41  ;;  %v749_v3 = vpop.f32.mrb[19].mxu1  ;;  %v908_v8 = vsel %vm874_vm6, %v855_v62, 0.0 }
 0x1df   :  { %v906_v4 = vsel %vm874_vm6, %v854_v63, 0.0  ;;  %v750_v5 = vadd.f32 %v1736_v41, %v749_v3 }
 0x1e0   :  { %v907_v6 = vadd.f32 %v906_v4, %v905_v1  ;;  %v857_v7 = vmax.f32 %v755_v2, 0.0 }
 0x1e1   :  { %v856_v9 = vmax.f32 %v750_v5, 0.0  ;;  %v1334_v10 = vpop.f32.mrb[20].mxu1 }
 0x1e2   :  { %v1776_v11 = vadd.f32 %v908_v8, %v907_v6  ;;  %v917_v12 = vsel %vm874_vm6, %v857_v7, 0.0  ;;  %v765_v13 = vadd.f32 %v1334_v10, %v1736_v41  ;;  %v759_v14 = vpop.f32.mrb[21].mxu1 }
 0x1e3   :  { %v916_v15 = vsel %vm874_vm6, %v856_v9, 0.0  ;;  %v760_v16 = vadd.f32 %v1736_v41, %v759_v14 }
 0x1e4   :  { %v918_v17 = vadd.f32 %v917_v12, %v916_v15  ;;  %v859_v18 = vmax.f32 %v765_v13, 0.0 }
 0x1e5   :  { %v858_v19 = vmax.f32 %v760_v16, 0.0  ;;  %v1337_v20 = vpop.f32.mrb[22].mxu1 }
 0x1e6   :  { %v775_v21 = vadd.f32 %v1337_v20, %v1736_v41  ;;  %v769_v22 = vpop.f32.mrb[23].mxu1  ;;  %v921_v26 = vsel %vm874_vm6, %v859_v18, 0.0  ;;  %v910_v18 = vrot.slane %v1776_v11, 4 }
 0x1e7   :  { %v919_v23 = vsel %vm874_vm6, %v858_v19, 0.0  ;;  %v770_v24 = vadd.f32 %v1736_v41, %v769_v22 }
 0x1e8   :  { %v920_v25 = vadd.f32 %v919_v23, %v918_v17  ;;  %v861_v27 = vmax.f32 %v775_v21, 0.0 }
 0x1e9   :  { %v860_v28 = vmax.f32 %v770_v24, 0.0  ;;  %v1340_v29 = vpop.f32.mrb[24].mxu1 }
 0x1ea   :  { %v922_v30 = vadd.f32 %v921_v26, %v920_v25  ;;  %v785_v31 = vadd.f32 %v1340_v29, %v1736_v41  ;;  %v779_v32 = vpop.f32.mrb[25].mxu1  ;;  %v925_v36 = vsel %vm874_vm6, %v861_v27, 0.0 }
 0x1eb   :  { %v923_v33 = vsel %vm874_vm6, %v860_v28, 0.0  ;;  %v780_v34 = vadd.f32 %v1736_v41, %v779_v32  ;;  %v911_v28 = vadd.f32 %v910_v18, %v1776_v11 }
 0x1ec   :  { %v924_v35 = vadd.f32 %v923_v33, %v922_v30  ;;  %v863_v37 = vmax.f32 %v785_v31, 0.0 }
 0x1ed   :  { %v862_v38 = vmax.f32 %v780_v34, 0.0  ;;  %v1343_v39 = vpop.f32.mrb[26].mxu1  ;;  %v912_v33 = vrot.slane %v911_v28, 2 }
 0x1ee   :  { %v926_v55 = vadd.f32 %v925_v36, %v924_v35  ;;  %v795_v40 = vadd.f32 %v1343_v39, %v1736_v41  ;;  %v789_v42 = vpop.f32.mrb[27].mxu1  ;;  %v929_v46 = vsel %vm874_vm6, %v863_v37, 0.0 }
 0x1ef   :  { %v927_v43 = vsel %vm874_vm6, %v862_v38, 0.0  ;;  %v790_v44 = vadd.f32 %v1736_v41, %v789_v42  ;;  %v913_v36 = vadd.f32 %v912_v33, %v911_v28 }
 0x1f0   :  { %v928_v45 = vadd.f32 %v927_v43, %v926_v55  ;;  %v865_v47 = vmax.f32 %v795_v40, 0.0 }
 0x1f1   :  { %v864_v48 = vmax.f32 %v790_v44, 0.0  ;;  %v1346_v49 = vpop.f32.mrb[28].mxu1  ;;  %v1132_v44 = vld [vmem:[%s1837_s6] ss:$0 sm:$0xff] }
 0x1f2   :  { %v930_v50 = vadd.f32 %v929_v46, %v928_v45  ;;  %v805_v51 = vadd.f32 %v1346_v49, %v1736_v41  ;;  %v799_v52 = vpop.f32.mrb[29].mxu1  ;;  %v933_v57 = vsel %vm874_vm6, %v865_v47, 0.0 }
 0x1f3   :  { %v931_v53 = vsel %vm874_vm6, %v864_v48, 0.0  ;;  %v800_v54 = vadd.f32 %v1736_v41, %v799_v52 }
 0x1f4   :  { %v932_v56 = vadd.f32 %v931_v53, %v930_v50  ;;  %v867_v58 = vmax.f32 %v805_v51, 0.0 }
 0x1f5   :  { %v866_v59 = vmax.f32 %v800_v54, 0.0  ;;  %v1349_v60 = vpop.f32.mrb[30].mxu1 }
 0x1f6   :  { %v934_v61 = vadd.f32 %v933_v57, %v932_v56  ;;  %v815_v62 = vadd.f32 %v1349_v60, %v1736_v41  ;;  %v809_v63 = vpop.f32.mrb[31].mxu1  ;;  %v937_v3 = vsel %vm874_vm6, %v867_v58, 0.0 }
 0x1f7   :  { %v935_v0 = vsel %vm874_vm6, %v866_v59, 0.0  ;;  %v810_v1 = vadd.f32 %v1736_v41, %v809_v63 }
 0x1f8   :  { %v936_v2 = vadd.f32 %v935_v0, %v934_v61  ;;  %v869_v4 = vmax.f32 %v815_v62, 0.0 }
 0x1f9   :  { %v868_v5 = vmax.f32 %v810_v1, 0.0  ;;  %v1352_v6 = vpop.f32.mrb[32].mxu1 }
 0x1fa   :  { %v938_v7 = vadd.f32 %v937_v3, %v936_v2  ;;  %v825_v8 = vadd.f32 %v1352_v6, %v1736_v41  ;;  %v819_v9 = vpop.f32.mrb[33].mxu1  ;;  %v941_v14 = vsel %vm874_vm6, %v869_v4, 0.0 }
 0x1fb   :  { %v939_v10 = vsel %vm874_vm6, %v868_v5, 0.0  ;;  %v820_v12 = vadd.f32 %v1736_v41, %v819_v9 }
 0x1fc   :  { %v940_v13 = vadd.f32 %v939_v10, %v938_v7  ;;  %v871_v15 = vmax.f32 %v825_v8, 0.0 }
 0x1fd   :  { %v870_v16 = vmax.f32 %v820_v12, 0.0  ;;  %v1355_v17 = vpop.f32.mrb[34].mxu1 }
 0x1fe   :  { %v942_v19 = vadd.f32 %v941_v14, %v940_v13  ;;  %v835_v20 = vadd.f32 %v1355_v17, %v1736_v41  ;;  %v829_v21 = vpop.f32.mrb[35].mxu1  ;;  %v945_v25 = vsel %vm874_vm6, %v871_v15, 0.0 }
 0x1ff   :  { %v943_v22 = vsel %vm874_vm6, %v870_v16, 0.0  ;;  %v830_v23 = vadd.f32 %v1736_v41, %v829_v21  ;;  %v914_v41 = vrot.slane %v913_v36, 1 }
 0x200   :  { %v944_v24 = vadd.f32 %v943_v22, %v942_v19  ;;  %v873_v26 = vmax.f32 %v835_v20, 0.0 }
 0x201   :  { %v872_v27 = vmax.f32 %v830_v23, 0.0  ;;  %v915_v40 = vadd.f32 %v914_v41, %v913_v36 }
 0x202   :  { %v946_v29 = vadd.f32 %v945_v25, %v944_v24  ;;  %v949_v32 = vsel %vm874_vm6, %v873_v26, 0.0 }
 0x203   :  { %v947_v30 = vsel %vm874_vm6, %v872_v27, 0.0 }
 0x204   :  { %v948_v31 = vadd.f32 %v947_v30, %v946_v29 }
 0x206   :  { %v950_v34 = vadd.f32 %v949_v32, %v948_v31 }
 0x208   :  { %v951_v35 = vrot.slane %v950_v34, 4 }
 0x20a   :  { %v952_v37 = vadd.f32 %v951_v35, %v950_v34 }
 0x20c   :  { %v953_v38 = vrot.slane %v952_v37, 2 }
 0x20e   :  { %v954_v39 = vadd.f32 %v953_v38, %v952_v37 }
 0x210   :  { %v955_v55 = vrot.slane %v954_v39, 1 }
 0x212   :  { %v956_v42 = vadd.f32 %v955_v55, %v954_v39 }
 0x214   :  { %v957_v43 = vsel %vm183_vm0, %v915_v40, %v956_v42 }
 0x215   :  { %v958_v11 = vmul.f32 0.0069444445, %v957_v43 }
 0x217   :  { %1361 = vmatmul.mubr.msk.f32.vlgmr.msra.gmra.mrb[36].mxu0 %vm874_vm6, %v958_v11 }
 0x2ea   :  { %v1037_v45 = vpop.f32.mrb[36].mxu0 }
 0x2eb   :  { %v1038_v46 = vadd.f32 %v1132_v44, %v1037_v45  ;;  %v1362_v47 = vpop.f32.mrb[37].mxu0 }
 0x2ed   :  { %1042 = vst.msk [vmem:[#allocation2] sm:$0x3] %vm1041_vm7, %v1038_v46 }
 0x2ee   :  { %1408 = shalt.err (!%p1405_p4)
}
 0x2ef   :  { %s1409_s13 = scalar_lea.hbm %s1838_s7, 32 }
 0x2f0   :  { %p1410_p5 = scmp.ne.s32.totalorder %s1838_s7, %s1409_s13  ;;  %p1413_p6 = scmp.lt.u32.totalorder %s1409_s13, %s1838_s7 }
 0x2f2   :  { %p1415_p7 = pnand %p1413_p6, %p1410_p5 }
 0x2f4   :  { %1418 = shalt.err (!%p1415_p7)
}
 0x2f5   :  { %1052 = dma.vmem_to_hbm [thread:$0]  %s1050_s9, 32, %s1838_s7, [#allocation3]  }
 0x2f6   :  { %1419 = dma.done.wait [#allocation3], 32  }
 0x2f7   :  { %1420 = vsyncadd [#allocation3], 4294967264 }
 0x2f8   :  { %1056 = vsyncpa [#allocation3], 1 }

</bundles_post_ra>
